<compile_context>
chip_gen: v5e
topology: v5e:2x2
jax: 0.10.0
libtpu: 0.0.40
codegen_flags: <defaults>
</compile_context>

<pallas_src>
import jax
import jax.numpy as jnp
from jax import lax
from jax.experimental import pallas as pl
from jax.experimental.pallas import tpu as pltpu


_ACC_ROWS = 8  # one f32 vreg worth of sublanes (accumulator rows)


def _round_up(x, m):
    return ((x + m - 1) // m) * m


def _sublane_pack(dtype):
    """Sublane packing factor: 8 for 32-bit, 16 for 16-bit, 32 for 8-bit dtypes."""
    bits = jnp.dtype(dtype).itemsize * 8
    return max(_ACC_ROWS, 256 // bits)


def _make_kernel(n_rows, tile_n, steps_per_shard):
    """BCE-with-logits partial-sum kernel (unweighted; weighting done in wrapper)."""

    def kernel(x_ref, t_ref, o_ref):
        s = pl.program_id(0)   # shard axis ("parallel")
        i = pl.program_id(1)   # reduction axis within shard ("arbitrary")

        @pl.when(i == 0)
        def _init():
            o_ref[...] = jnp.zeros_like(o_ref)

        x = x_ref[...].astype(jnp.float32)       # (tile_n, C) logits
        t = t_ref[...].astype(jnp.float32)       # (tile_n, C) targets

        # Numerically stable BCE with logits: max(x,0) - x*t + log1p(exp(-|x|))
        loss = jnp.maximum(x, 0.0) - x * t + jnp.log1p(jnp.exp(-jnp.abs(x)))

        # Un-clamped logical step id (index_map may have clamped the DMA source
        # for padded trailing steps; we mask those rows to zero here).
        step = s * steps_per_shard + i
        base = step * tile_n

        def fold(v):
            # (tile_n, C) -> (1, ACC_ROWS, C) with pure VPU adds, layout-preserving.
            tn, c = v.shape
            return v.reshape(tn // _ACC_ROWS, _ACC_ROWS, c).sum(axis=0)[None, :, :]

        @pl.when(base + tile_n <= n_rows)        # full tile: no mask work
        def _full():
            o_ref[...] += fold(loss)

        @pl.when(base + tile_n > n_rows)         # ragged / padded tile
        def _ragged():
            row_ids = base + lax.broadcasted_iota(jnp.int32, loss.shape, 0)
            # Keep this a select (not a multiplicative mask): garbage rows may
            # contain NaN/Inf which must not propagate.
            o_ref[...] += fold(jnp.where(row_ids < n_rows, loss, 0.0))

    return kernel


def weighted_multilabel(outputs, targets, weights, *, tile_n=None, n_shards=None):
    """Returns ((BCEWithLogits(outputs, targets) * weights).mean()) as an f32 scalar."""
    N, C = outputs.shape
    assert targets.shape == (N, C)
    assert weights.shape == (C,)

    itemsize = jnp.dtype(outputs.dtype).itemsize
    pack = max(_sublane_pack(outputs.dtype), _sublane_pack(targets.dtype))

    # Tile size: ~2 MiB per input tile (HBM-roofline plateau on v5e/v6e/v7x),
    # rounded to the dtype sublane pack and clamped to the (pack-rounded) batch.
    if tile_n is None:
        target_bytes = 2 << 20
        tile_n = max(pack, target_bytes // max(C * itemsize, 1))
    tile_n = max(pack, (tile_n // pack) * pack)
    tile_n = min(tile_n, _round_up(N, pack))

    steps_total = pl.cdiv(N, tile_n)

    # Always shard across 2 TensorCores when there is more than one step (v7x);
    # odd step counts are handled by ceil-division + clamped index_map, so no
    # core is ever idled.  On v5e/v6e this is a harmless serial loop.
    if n_shards is None:
        n_shards = 2 if steps_total >= 2 else 1
    steps_per_shard = pl.cdiv(steps_total, n_shards)

    kernel = _make_kernel(N, tile_n, steps_per_shard)

    def in_map(s, i):
        # Clamp padded trailing step(s) to a valid block (duplicate read of the
        # last real tile); the kernel masks those rows to zero.
        return (jnp.minimum(s * steps_per_shard + i, steps_total - 1), 0)

    # Explicit VMEM budget: 2 inputs x 2 buffers x tile + accumulators + margin.
    # Keeps big tiles safe on v5e's 16 MiB scoped default, capped for v7x (64 MiB).
    tile_bytes = tile_n * C * itemsize
    vmem_limit = int(min(48 << 20, max(16 << 20, 2 * (2 * 2 * tile_bytes) + (2 << 20))))

    partials = pl.pallas_call(
        kernel,
        out_shape=jax.ShapeDtypeStruct((n_shards, _ACC_ROWS, C), jnp.float32),
        grid_spec=pl.GridSpec(
            grid=(n_shards, steps_per_shard),
            in_specs=[
                pl.BlockSpec((tile_n, C), in_map),
                pl.BlockSpec((tile_n, C), in_map),
            ],
            out_specs=pl.BlockSpec((1, _ACC_ROWS, C), lambda s, i: (s, 0, 0)),
        ),
        compiler_params=pltpu.CompilerParams(
            dimension_semantics=("parallel", "arbitrary"),
            vmem_limit_bytes=vmem_limit,
        ),
    )(outputs, targets)

    # Finish: per-class weighting + global mean (tiny XLA ops on (n_shards,8,C)).
    per_class = jnp.sum(partials, axis=(0, 1))                   # (C,)
    total = jnp.sum(per_class * weights.astype(jnp.float32))
    return (total / jnp.float32(N * C)).astype(jnp.float32)


def _reference(outputs, targets, weights):
    x = outputs.astype(jnp.float32)
    t = targets.astype(jnp.float32)
    loss = jnp.maximum(x, 0.0) - x * t + jnp.log1p(jnp.exp(-jnp.abs(x)))
    return (loss * weights.astype(jnp.float32)[None, :]).mean()


if __name__ == "__main__":
    key = jax.random.PRNGKey(0)
    k1, k2, k3 = jax.random.split(key, 3)

    # Primary small case (aligned): N=16, C=128 (class axis maps to 128 lanes).
    N, C = 16, 128
    outputs = jax.random.normal(k1, (N, C), dtype=jnp.float32)
    targets = jax.random.bernoulli(k2, p=0.3, shape=(N, C)).astype(jnp.float32)
    weights = jax.random.uniform(k3, (C,), dtype=jnp.float32, minval=0.5, maxval=1.5)

    got = jax.block_until_ready(weighted_multilabel(outputs, targets, weights))
    want = _reference(outputs, targets, weights)
    assert jnp.allclose(got, want, rtol=1e-5, atol=1e-5), (got, want)

    # Multi-step accumulation + 2-shard parallel axis (even step count).
    N2 = 96
    o2 = jax.random.normal(jax.random.fold_in(key, 1), (N2, C), dtype=jnp.float32)
    t2 = jax.random.bernoulli(jax.random.fold_in(key, 2), p=0.4,
                              shape=(N2, C)).astype(jnp.float32)
    got2 = jax.block_until_ready(weighted_multilabel(o2, t2, weights, tile_n=16))
    want2 = _reference(o2, t2, weights)
    assert jnp.allclose(got2, want2, rtol=1e-5, atol=1e-5), (got2, want2)

    # Odd step count with 2 shards: exercises the clamped/padded trailing step.
    got2b = jax.block_until_ready(weighted_multilabel(o2, t2, weights, tile_n=32))
    assert jnp.allclose(got2b, want2, rtol=1e-5, atol=1e-5), (got2b, want2)

    # Ragged batch (N not a multiple of the tile): exercises the gated row mask.
    N3 = 52
    o3 = jax.random.normal(jax.random.fold_in(key, 3), (N3, C), dtype=jnp.float32)
    t3 = jax.random.bernoulli(jax.random.fold_in(key, 4), p=0.2,
                              shape=(N3, C)).astype(jnp.float32)
    got3 = jax.block_until_ready(weighted_multilabel(o3, t3, weights))
    want3 = _reference(o3, t3, weights)
    assert jnp.allclose(got3, want3, rtol=1e-5, atol=1e-5), (got3, want3)

    # bf16 ragged batch on the DEFAULT tile path: exercises the 16-row sublane
    # pack rounding (previously only tile_n=16 was tested for bf16).
    o3b = o3.astype(jnp.bfloat16)
    t3b = t3.astype(jnp.bfloat16)
    got3b = jax.block_until_ready(weighted_multilabel(o3b, t3b, weights))
    want3b = _reference(o3b, t3b, weights)
    assert jnp.allclose(got3b, want3b, rtol=1e-3, atol=1e-3), (got3b, want3b)

    # bf16 multi-step + 2 shards (halves HBM traffic; kernel upcasts to f32).
    o4 = o2.astype(jnp.bfloat16)
    t4 = t2.astype(jnp.bfloat16)
    got4 = jax.block_until_ready(weighted_multilabel(o4, t4, weights, tile_n=16))
    want4 = _reference(o4, t4, weights)
    assert jnp.allclose(got4, want4, rtol=1e-3, atol=1e-3), (got4, want4)

    print("KERNEL_OK")
</pallas_src>

<mosaic_0001>
module attributes {stable_mosaic.version = 11 : i64} {
  func.func @kernel(%arg0: i32, %arg1: i32, %arg2: memref<16x128xf32, #tpu.memory_space<vmem>>, %arg3: memref<16x128xf32, #tpu.memory_space<vmem>>, %arg4: memref<1x8x128xf32, #tpu.memory_space<vmem>>) attributes {dimension_semantics = [#tpu.dimension_semantics<parallel>, #tpu.dimension_semantics<arbitrary>], iteration_bounds = array<i64: 1, 1>, scalar_prefetch = 0 : i64, scratch_operands = 0 : i64, tpu.core_type = #tpu.core_type<tc>, window_params = [{transform_indices = @transform_0, window_bounds = array<i64: 16, 128>}, {transform_indices = @transform_1, window_bounds = array<i64: 16, 128>}, {transform_indices = @transform_2, window_bounds = array<i64: 1, 8, 128>}]} {
    %c0_i32 = arith.constant 0 : i32
    %0 = arith.cmpi eq, %arg1, %c0_i32 : i32
    %1 = arith.extui %0 : i1 to i32
    %c0_i32_0 = arith.constant 0 : i32
    %2 = arith.cmpi ne, %1, %c0_i32_0 : i32
    scf.if %2 {
      %cst_11 = arith.constant 0.000000e+00 : f32
      %26 = vector.broadcast %cst_11 : f32 to vector<1x8x128xf32>
      %c0_12 = arith.constant 0 : index
      %c0_13 = arith.constant 0 : index
      %c0_14 = arith.constant 0 : index
      %27 = vector.load %arg4[%c0_12, %c0_13, %c0_14] : memref<1x8x128xf32, #tpu.memory_space<vmem>>, vector<1x8x128xf32>
      tpu.vector_store %arg4[%c0_12, %c0_13, %c0_14], %26 {strides = array<i32>} : memref<1x8x128xf32, #tpu.memory_space<vmem>>, vector<1x8x128xf32>,
    } else {
    }
    %c0 = arith.constant 0 : index
    %c0_1 = arith.constant 0 : index
    %3 = vector.load %arg2[%c0, %c0_1] : memref<16x128xf32, #tpu.memory_space<vmem>>, vector<16x128xf32>
    %c0_2 = arith.constant 0 : index
    %c0_3 = arith.constant 0 : index
    %4 = vector.load %arg3[%c0_2, %c0_3] : memref<16x128xf32, #tpu.memory_space<vmem>>, vector<16x128xf32>
    %cst = arith.constant 0.000000e+00 : f32
    %5 = vector.broadcast %cst : f32 to vector<16x128xf32>
    %6 = arith.maximumf %3, %5 : vector<16x128xf32>
    %7 = arith.mulf %3, %4 : vector<16x128xf32>
    %8 = arith.subf %6, %7 : vector<16x128xf32>
    %9 = math.absf %3 : vector<16x128xf32>
    %cst_4 = arith.constant 0.000000e+00 : f32
    %10 = vector.broadcast %cst_4 : f32 to vector<16x128xf32>
    %11 = arith.subf %10, %9 : vector<16x128xf32>
    %12 = math.exp %11 : vector<16x128xf32>
    %13 = math.log1p %12 : vector<16x128xf32>
    %14 = arith.addf %8, %13 : vector<16x128xf32>
    %c1_i32 = arith.constant 1 : i32
    %15 = arith.muli %arg0, %c1_i32 : i32
    %16 = arith.addi %15, %arg1 : i32
    %c16_i32 = arith.constant 16 : i32
    %17 = arith.muli %16, %c16_i32 : i32
    %c16_i32_5 = arith.constant 16 : i32
    %18 = arith.addi %17, %c16_i32_5 : i32
    %c16_i32_6 = arith.constant 16 : i32
    %19 = arith.cmpi sle, %18, %c16_i32_6 : i32
    %20 = arith.extui %19 : i1 to i32
    %c0_i32_7 = arith.constant 0 : i32
    %21 = arith.cmpi ne, %20, %c0_i32_7 : i32
    scf.if %21 {
      %c0_11 = arith.constant 0 : index
      %c0_12 = arith.constant 0 : index
      %c0_13 = arith.constant 0 : index
      %26 = vector.load %arg4[%c0_11, %c0_12, %c0_13] : memref<1x8x128xf32, #tpu.memory_space<vmem>>, vector<1x8x128xf32>
      %27 = vector.shape_cast %14 : vector<16x128xf32> to vector<2x8x128xf32>
      %cst_14 = arith.constant dense<0.000000e+00> : vector<8x128xf32>
      %28 = vector.multi_reduction <add>, %27, %cst_14 [0] : vector<2x8x128xf32> to vector<8x128xf32>
      %29 = vector.shape_cast %28 : vector<8x128xf32> to vector<1x8x128xf32>
      %30 = arith.addf %26, %29 : vector<1x8x128xf32>
      %c0_15 = arith.constant 0 : index
      %c0_16 = arith.constant 0 : index
      %c0_17 = arith.constant 0 : index
      %31 = vector.load %arg4[%c0_15, %c0_16, %c0_17] : memref<1x8x128xf32, #tpu.memory_space<vmem>>, vector<1x8x128xf32>
      tpu.vector_store %arg4[%c0_15, %c0_16, %c0_17], %30 {strides = array<i32>} : memref<1x8x128xf32, #tpu.memory_space<vmem>>, vector<1x8x128xf32>,
    } else {
    }
    %c16_i32_8 = arith.constant 16 : i32
    %22 = arith.addi %17, %c16_i32_8 : i32
    %c16_i32_9 = arith.constant 16 : i32
    %23 = arith.cmpi sgt, %22, %c16_i32_9 : i32
    %24 = arith.extui %23 : i1 to i32
    %c0_i32_10 = arith.constant 0 : i32
    %25 = arith.cmpi ne, %24, %c0_i32_10 : i32
    scf.if %25 {
      %26 = tpu.iota {dimensions = array<i32: 0>} : vector<16x128xi32>
      %27 = vector.broadcast %17 : i32 to vector<16x128xi32>
      %28 = arith.addi %27, %26 : vector<16x128xi32>
      %c0_11 = arith.constant 0 : index
      %c0_12 = arith.constant 0 : index
      %c0_13 = arith.constant 0 : index
      %29 = vector.load %arg4[%c0_11, %c0_12, %c0_13] : memref<1x8x128xf32, #tpu.memory_space<vmem>>, vector<1x8x128xf32>
      %c16_i32_14 = arith.constant 16 : i32
      %30 = vector.broadcast %c16_i32_14 : i32 to vector<16x128xi32>
      %31 = arith.cmpi slt, %28, %30 : vector<16x128xi32>
      %cst_15 = arith.constant 0.000000e+00 : f32
      %32 = vector.broadcast %cst_15 : f32 to vector<16x128xf32>
      %33 = arith.select %31, %14, %32 : vector<16x128xi1>, vector<16x128xf32>
      %34 = vector.shape_cast %33 : vector<16x128xf32> to vector<2x8x128xf32>
      %cst_16 = arith.constant dense<0.000000e+00> : vector<8x128xf32>
      %35 = vector.multi_reduction <add>, %34, %cst_16 [0] : vector<2x8x128xf32> to vector<8x128xf32>
      %36 = vector.shape_cast %35 : vector<8x128xf32> to vector<1x8x128xf32>
      %37 = arith.addf %29, %36 : vector<1x8x128xf32>
      %c0_17 = arith.constant 0 : index
      %c0_18 = arith.constant 0 : index
      %c0_19 = arith.constant 0 : index
      %38 = vector.load %arg4[%c0_17, %c0_18, %c0_19] : memref<1x8x128xf32, #tpu.memory_space<vmem>>, vector<1x8x128xf32>
      tpu.vector_store %arg4[%c0_17, %c0_18, %c0_19], %37 {strides = array<i32>} : memref<1x8x128xf32, #tpu.memory_space<vmem>>, vector<1x8x128xf32>,
    } else {
    }
    return
  }
  func.func @transform_0(%arg0: i32, %arg1: i32) -> (i32, i32) {
    %c1_i32 = arith.constant 1 : i32
    %0 = arith.muli %arg0, %c1_i32 : i32
    %1 = arith.addi %0, %arg1 : i32
    %c0_i32 = arith.constant 0 : i32
    %2 = arith.minsi %1, %c0_i32 : i32
    %c0_i32_0 = arith.constant 0 : i32
    %c0_i32_1 = arith.constant 0 : i32
    return %2, %c0_i32_0 : i32, i32
  }
  func.func @transform_1(%arg0: i32, %arg1: i32) -> (i32, i32) {
    %c1_i32 = arith.constant 1 : i32
    %0 = arith.muli %arg0, %c1_i32 : i32
    %1 = arith.addi %0, %arg1 : i32
    %c0_i32 = arith.constant 0 : i32
    %2 = arith.minsi %1, %c0_i32 : i32
    %c0_i32_0 = arith.constant 0 : i32
    %c0_i32_1 = arith.constant 0 : i32
    return %2, %c0_i32_0 : i32, i32
  }
  func.func @transform_2(%arg0: i32, %arg1: i32) -> (i32, i32, i32) {
    %c0_i32 = arith.constant 0 : i32
    %c0_i32_0 = arith.constant 0 : i32
    %c0_i32_1 = arith.constant 0 : i32
    return %arg0, %c0_i32, %c0_i32_0 : i32, i32, i32
  }
}

</mosaic_0001>

<bundles_post_ra>
// kernel: tpu_custom_call.1
= control target key start
LH: loop header
LB: loop body
LE: loop exit
PB: predicated region body
PF: predicated region fallthrough
CT: control target
= control target key end

     0   :  { %7 = vsyncpa [#allocation3], 0  ;;  %s279_s0 = inlined_call_operand.hbm [shape: f32[16,128], index: 0, kind: input, shape index: {}]   ;;  %s280_s1 = inlined_call_operand.hbm [shape: f32[16,128], index: 1, kind: input, shape index: {}]   ;;  %s281_s2 = inlined_call_operand.hbm [shape: f32[1,8,128], index: 2, kind: output, shape index: {}]  }
   0x1   :  { %8 = vsyncpa [#allocation6], 0 }
   0x2   :  { %9 = vsyncpa [#allocation4], 0  ;;  %s20_s11 = sshll.u32 %s279_s0, 4  ;;  %s250_s12 = smov [#allocation2]   ;;  %s21_s11 = int_to_ptr.hbm [resolvable:$true] %s20_s11 }
   0x3   :  { %s22_s13 = sshll.u32 %s250_s12, 4  ;;  %s39_s16 = sshll.u32 %s280_s1, 4  ;;  %s23_s13 = int_to_ptr.vmem [resolvable:$true] %s22_s13  ;;  %s40_s16 = int_to_ptr.hbm [resolvable:$true] %s39_s16 }
   0x4   :  { %s251_s17 = smov 128   ;;  %s252_s18 = smov 8  }
   0x5   :  { %28 = dma.hbm_to_vmem [thread:$0]  %s21_s11, 256, %s23_s13, [#allocation3], %s251_s17, %s251_s17, %s252_s18  }
   0x6   :  { %s253_s19 = smov [#allocation5]  }
   0x7   :  { %s41_s20 = sshll.u32 %s253_s19, 4  ;;  %s42_s20 = int_to_ptr.vmem [resolvable:$true] %s41_s20 }
   0x8   :  { %47 = dma.hbm_to_vmem [thread:$0]  %s40_s16, 256, %s42_s20, [#allocation6], %s251_s17, %s251_s17, %s252_s18  }
   0x9   :  { %244 = dma.done.wait [#allocation3], 256  }
   0xa   :  { %245 = vsyncadd [#allocation3], 4294967040 }
   0xb   :  { %246 = dma.done.wait [#allocation6], 256  }
   0xc   :  { %247 = vsyncadd [#allocation6], 4294967040  ;;  %v69_v0 = vld [vmem:[#allocation2] sm:$0xff]  ;;  %v70_v1 = vld [vmem:[#allocation2 + $0x8] sm:$0xff]  ;;  %s254_s0 = smov [#allocation7]   ;;  %s143_s23 = sshll.u32 %s281_s2, 4  ;;  %s144_s23 = int_to_ptr.hbm [resolvable:$true] %s143_s23 }
   0xd   :  { %v79_v2 = vand.u32 2147483647, %v69_v0  ;;  %v80_v3 = vand.u32 2147483647, %v70_v1  ;;  %v71_v12 = vld [vmem:[#allocation5] sm:$0xff]  ;;  %v72_v15 = vld [vmem:[#allocation5 + $0x8] sm:$0xff] }
   0xe   :  { %v73_v17 = vmax.f32 %v69_v0, 0.0  ;;  %v75_v18 = vmul.f32 %v71_v12, %v69_v0  ;;  %v74_v21 = vmax.f32 %v70_v1, 0.0  ;;  %v76_v22 = vmul.f32 %v72_v15, %v70_v1  ;;  %s141_s1 = sshll.u32 %s254_s0, 4  ;;  %s142_s1 = int_to_ptr.vmem [resolvable:$true] %s141_s1 }
   0xf   :  { %v81_v4 = vsub.f32 0.0, %v79_v2  ;;  %v82_v5 = vsub.f32 0.0, %v80_v3 }
  0x10   :  { %v77_v26 = vsub.f32 %v73_v17, %v75_v18  ;;  %v78_v29 = vsub.f32 %v74_v21, %v76_v22 }
  0x11   :  { %v83_v6 = vmul.f32 1.442695, %v81_v4  ;;  %v85_v7 = vmul.f32 1.442695, %v82_v5 }
  0x13   :  { %164 = vpow2.f32 %v83_v6 }
  0x14   :  { %166 = vpow2.f32 %v85_v7 }
  0x19   :  { %v165_v8 = vpop.eup %164 }
  0x1a   :  { %v167_v9 = vpop.eup %166  ;;  %v87_v10 = vadd.f32 1.0, %v165_v8  ;;  %v90_v11 = vmul.f32 -0.5, %v165_v8  ;;  %v93_v19 = vand.u32 2147483647, %v165_v8 }
  0x1b   :  { %v96_v13 = vadd.f32 1.0, %v167_v9  ;;  %v99_v14 = vmul.f32 -0.5, %v167_v9  ;;  %v102_v23 = vand.u32 2147483647, %v167_v9 }
  0x1c   :  { %168 = vlog2.f32 %v87_v10  ;;  %v91_v16 = vadd.f32 1.0, %v90_v11  ;;  %vm94_vm0 = vcmp.lt.f32.partialorder %v93_v19, 0.0004427343 }
  0x1d   :  { %170 = vlog2.f32 %v96_v13  ;;  %v100_v20 = vadd.f32 1.0, %v99_v14  ;;  %vm103_vm1 = vcmp.lt.f32.partialorder %v102_v23, 0.0004427343 }
  0x1e   :  { %v92_v24 = vmul.f32 %v165_v8, %v91_v16 }
  0x1f   :  { %v101_v27 = vmul.f32 %v167_v9, %v100_v20 }
  0x22   :  { %v169_v25 = vpop.eup %168 }
  0x23   :  { %v171_v28 = vpop.eup %170  ;;  %v89_v30 = vmul.f32 0.6931472, %v169_v25 }
  0x24   :  { %v98_v31 = vmul.f32 0.6931472, %v171_v28 }
  0x25   :  { %v95_v32 = vsel %vm94_vm0, %v92_v24, %v89_v30 }
  0x26   :  { %v104_v33 = vsel %vm103_vm1, %v101_v27, %v98_v31  ;;  %v105_v34 = vadd.f32 %v95_v32, %v77_v26 }
  0x27   :  { %v106_v35 = vadd.f32 %v104_v33, %v78_v29 }
  0x29   :  { %v115_v36 = vadd.f32 %v106_v35, %v105_v34 }
  0x2b   :  { %117 = vst [vmem:[#allocation7] sm:$0xff] %v115_v36 }
  0x2c   :  { %146 = dma.vmem_to_hbm [thread:$0]  %s142_s1, 128, %s144_s23, [#allocation4]  }
  0x2d   :  { %248 = dma.done.wait [#allocation4], 128  }
  0x2e   :  { %249 = vsyncadd [#allocation4], 4294967168 }
  0x2f   :  { %151 = vsyncpa [#allocation3], 1 }
  0x30   :  { %152 = vsyncpa [#allocation6], 1 }
  0x31   :  { %153 = vsyncpa [#allocation4], 1 }

</bundles_post_ra>
